<compile_context>
chip_gen: v6e
topology: v6e:2x2x1
jax: 0.10.0
libtpu: 0.0.40
codegen_flags: <defaults>
</compile_context>

<pallas_src>
import functools

import jax
import jax.numpy as jnp
from jax.experimental import pallas as pl
from jax.experimental.pallas import tpu as pltpu


# ----------------------------- Pallas kernel ---------------------------------
def lstm_wavefront_kernel(x_ref, wih0_ref, ball_ref, rhs_ref, fcw_ref, fcb_ref,
                          out_ref, gpre_ref, *,
                          num_layers, hidden, seq_len, batch_pad):
    L, H, T, Bp = num_layers, hidden, seq_len, batch_pad
    G = 4 * H            # gate width of one layer
    W = L * G            # stacked gate width of all layers

    # ---------------- hoisted phase (off the serial critical path) ------------
    # Layer-0 input projection for ALL timesteps: one big MXU matmul.
    proj0 = jnp.dot(x_ref[...], wih0_ref[...],
                    preferred_element_type=jnp.float32) + ball_ref[0:1, :]
    gpre_ref[:, 0:G] = proj0
    # Layers >= 1: their "pre-gates" are just the (constant) bias; the actual input
    # projection (h_{l-1} @ W_ih_l^T) is folded into the per-step stacked matmul.
    for l in range(1, L):
        gpre_ref[:, l * G:(l + 1) * G] = jnp.broadcast_to(
            ball_ref[l:l + 1, :], (T * Bp, G))

    # Fused gate nonlinearity constants (hoisted, full (Bp, W) so no per-step broadcast):
    #   sigmoid(x) = 0.5*tanh(0.5*x) + 0.5  on i/f/o columns ; tanh(x) on g columns.
    col = jax.lax.broadcasted_iota(jnp.int32, (Bp, W), 1) % G
    is_g = jnp.logical_and(col >= 2 * H, col < 3 * H)
    g_scale = jnp.where(is_g, 1.0, 0.5).astype(jnp.float32)
    g_shift = jnp.where(is_g, 0.0, 0.5).astype(jnp.float32)

    rhs = rhs_ref[...]                                   # (L*H, L*4H) bf16, hoisted load

    h = [jnp.zeros((Bp, H), jnp.float32) for _ in range(L)]
    c = [jnp.zeros((Bp, H), jnp.float32) for _ in range(L)]

    # ---------------- wavefront recurrence: T + L - 1 serial steps ------------
    for s in range(T + L - 1):                           # static -> fully unrolled
        t0 = min(s, T - 1)                               # gpre row block (layer-0 time)
        # Stacked LHS from the *previous* step's states; one matmul for all layers.
        lhs = jnp.concatenate(h, axis=1).astype(jnp.bfloat16)        # (Bp, L*H)
        mm = jnp.dot(lhs, rhs, preferred_element_type=jnp.float32)   # (Bp, L*4H)
        gates = gpre_ref[t0 * Bp:(t0 + 1) * Bp, :] + mm
        act = jnp.tanh(gates * g_scale) * g_scale + g_shift          # one full-width EUP pass

        for l in range(L):
            t = s - l                                    # time this layer processes now
            if 0 <= t < T:                               # statically skip inactive layers
                base = l * G
                i = act[:, base + 0 * H: base + 1 * H]
                f = act[:, base + 1 * H: base + 2 * H]
                g = act[:, base + 2 * H: base + 3 * H]
                o = act[:, base + 3 * H: base + 4 * H]
                c[l] = f * c[l] + i * g
                h[l] = o * jnp.tanh(c[l])

    # -------- FC on the last timestep of the top layer (== out[:, -1, :]) ------
    out_ref[...] = (jnp.dot(h[L - 1].astype(jnp.bfloat16), fcw_ref[...],
                            preferred_element_type=jnp.float32)
                    + fcb_ref[...]).astype(out_ref.dtype)


# ------------------------------ wrappers ---------------------------------------
def prepare_params(params, *, num_layers, hidden_size):
    """One-time (outside jit/per-call path) weight repacking for the kernel."""
    H = hidden_size
    # Combined recurrent RHS: K rows are the stacked h_l, N columns are stacked gates.
    #   rows l*H:(l+1)*H , cols l*4H:(l+1)*4H     = W_hh_l^T
    #   rows l*H:(l+1)*H , cols (l+1)*4H:(l+2)*4H = W_ih_{l+1}^T   (layer>0 inputs are H wide)
    rhs = jnp.zeros((num_layers * H, num_layers * 4 * H), jnp.float32)
    for l in range(num_layers):
        rhs = rhs.at[l * H:(l + 1) * H, l * 4 * H:(l + 1) * 4 * H].set(
            params[f"w_hh_{l}"].T)
        if l + 1 < num_layers:
            rhs = rhs.at[l * H:(l + 1) * H, (l + 1) * 4 * H:(l + 2) * 4 * H].set(
                params[f"w_ih_{l + 1}"].T)
    b_all = jnp.stack([params[f"b_ih_{l}"] + params[f"b_hh_{l}"]
                       for l in range(num_layers)])                     # (L, 4H)
    return dict(
        wih0_t=params["w_ih_0"].T.astype(jnp.bfloat16),                 # (D, 4H)
        b_all=b_all.astype(jnp.float32),                                # (L, 4H)
        rhs=rhs.astype(jnp.bfloat16),                                   # (L*H, L*4H)
        fc_w_t=params["fc_w"].T.astype(jnp.bfloat16),                   # (H, O)
        fc_b=params["fc_b"].reshape(1, -1).astype(jnp.float32),         # (1, O)
    )


@functools.partial(jax.jit, static_argnames=("num_layers", "hidden_size", "output_size"))
def task_config_network(x, prep, *, num_layers, hidden_size, output_size):
    B, T, D = x.shape
    Bp = max(8, ((B + 7) // 8) * 8)                      # pad batch to full sublanes

    # (B, T, D) -> time-major (T, Bp, D) -> flat (T*Bp, D), bf16 MXU operand.
    x_tm = jnp.transpose(x, (1, 0, 2))
    x_tm = jnp.pad(x_tm, ((0, 0), (0, Bp - B), (0, 0)))
    x_flat = x_tm.reshape(T * Bp, D).astype(jnp.bfloat16)

    kernel = functools.partial(lstm_wavefront_kernel, num_layers=num_layers,
                               hidden=hidden_size, seq_len=T, batch_pad=Bp)
    out = pl.pallas_call(
        kernel,
        out_shape=jax.ShapeDtypeStruct((Bp, output_size), jnp.float32),
        in_specs=[pl.BlockSpec(memory_space=pltpu.MemorySpace.VMEM)] * 6,
        out_specs=pl.BlockSpec(memory_space=pltpu.MemorySpace.VMEM),
        scratch_shapes=[
            pltpu.VMEM((T * Bp, num_layers * 4 * hidden_size), jnp.float32),  # gpre
        ],
    )(x_flat, prep["wih0_t"], prep["b_all"], prep["rhs"],
      prep["fc_w_t"], prep["fc_b"])
    return out[:B]


# --------------------------- pure-JAX reference --------------------------------
def reference_forward(x, params, *, num_layers, hidden_size):
    B, T, _ = x.shape
    seq = x
    for l in range(num_layers):
        w_ih, w_hh = params[f"w_ih_{l}"], params[f"w_hh_{l}"]
        b = params[f"b_ih_{l}"] + params[f"b_hh_{l}"]
        h = jnp.zeros((B, hidden_size), jnp.float32)
        c = jnp.zeros((B, hidden_size), jnp.float32)
        outs = []
        for t in range(T):
            gates = seq[:, t, :] @ w_ih.T + h @ w_hh.T + b
            i, f, g, o = jnp.split(gates, 4, axis=-1)
            i, f, o = jax.nn.sigmoid(i), jax.nn.sigmoid(f), jax.nn.sigmoid(o)
            g = jnp.tanh(g)
            c = f * c + i * g
            h = o * jnp.tanh(c)
            outs.append(h)
        seq = jnp.stack(outs, axis=1)
    return seq[:, -1, :] @ params["fc_w"].T + params["fc_b"]


# ------------------------------- main -------------------------------------------
if __name__ == "__main__":
    # Small shapes consistent with the module's forward.
    B, T = 2, 8
    input_size, hidden_size, num_layers, output_size = 16, 32, 2, 8

    key = jax.random.PRNGKey(0)
    bound = 1.0 / (hidden_size ** 0.5)

    params = {}
    for l in range(num_layers):
        d_in = input_size if l == 0 else hidden_size
        key, k1, k2, k3, k4 = jax.random.split(key, 5)
        params[f"w_ih_{l}"] = jax.random.uniform(k1, (4 * hidden_size, d_in),
                                                 jnp.float32, -bound, bound)
        params[f"w_hh_{l}"] = jax.random.uniform(k2, (4 * hidden_size, hidden_size),
                                                 jnp.float32, -bound, bound)
        params[f"b_ih_{l}"] = jax.random.uniform(k3, (4 * hidden_size,),
                                                 jnp.float32, -bound, bound)
        params[f"b_hh_{l}"] = jax.random.uniform(k4, (4 * hidden_size,),
                                                 jnp.float32, -bound, bound)
    key, k1, k2, kx = jax.random.split(key, 4)
    params["fc_w"] = jax.random.uniform(k1, (output_size, hidden_size),
                                        jnp.float32, -bound, bound)
    params["fc_b"] = jax.random.uniform(k2, (output_size,),
                                        jnp.float32, -bound, bound)

    x = jax.random.normal(kx, (B, T, input_size), jnp.float32)

    prep = prepare_params(params, num_layers=num_layers, hidden_size=hidden_size)
    out = task_config_network(x, prep, num_layers=num_layers,
                              hidden_size=hidden_size, output_size=output_size)
    out = jax.block_until_ready(out)

    ref = reference_forward(x, params, num_layers=num_layers,
                            hidden_size=hidden_size)
    assert out.shape == (B, output_size)
    assert jnp.allclose(out, ref, atol=5e-2, rtol=5e-2)

    print("KERNEL_OK")
</pallas_src>

<mosaic_0001>
module attributes {stable_mosaic.version = 11 : i64} {
  func.func @lstm_wavefront_kernel(%arg0: memref<64x16xbf16, #tpu.memory_space<vmem>>, %arg1: memref<16x128xbf16, #tpu.memory_space<vmem>>, %arg2: memref<2x128xf32, #tpu.memory_space<vmem>>, %arg3: memref<64x256xbf16, #tpu.memory_space<vmem>>, %arg4: memref<32x8xbf16, #tpu.memory_space<vmem>>, %arg5: memref<1x8xf32, #tpu.memory_space<vmem>>, %arg6: memref<8x8xf32, #tpu.memory_space<vmem>>, %arg7: memref<64x256xf32, #tpu.memory_space<vmem>>) attributes {dimension_semantics = [], scalar_prefetch = 0 : i64, scratch_operands = 1 : i64, tpu.core_type = #tpu.core_type<tc>} {
    %c0 = arith.constant 0 : index
    %c0_0 = arith.constant 0 : index
    %0 = vector.load %arg0[%c0, %c0_0] : memref<64x16xbf16, #tpu.memory_space<vmem>>, vector<64x16xbf16>
    %c0_1 = arith.constant 0 : index
    %c0_2 = arith.constant 0 : index
    %1 = vector.load %arg1[%c0_1, %c0_2] : memref<16x128xbf16, #tpu.memory_space<vmem>>, vector<16x128xbf16>
    %cst = arith.constant dense<0.000000e+00> : vector<64x128xf32>
    %2 = tpu.matmul %0, %1, %cst {dimension_numbers = #tpu.dot_dimension_numbers<[1], [0], [0], [1], [0, 0, 1, 1], [], []>} : vector<64x16xbf16>, vector<16x128xbf16>, vector<64x128xf32> -> vector<64x128xf32>
    %c0_3 = arith.constant 0 : index
    %c0_4 = arith.constant 0 : index
    %3 = vector.load %arg2[%c0_3, %c0_4] : memref<2x128xf32, #tpu.memory_space<vmem>>, vector<1x128xf32>
    %4 = vector.broadcast %3 : vector<1x128xf32> to vector<64x128xf32>
    %5 = arith.addf %2, %4 : vector<64x128xf32>
    %c0_5 = arith.constant 0 : index
    %c0_6 = arith.constant 0 : index
    %6 = vector.load %arg7[%c0_5, %c0_6] : memref<64x256xf32, #tpu.memory_space<vmem>>, vector<64x128xf32>
    tpu.vector_store %arg7[%c0_5, %c0_6], %5 {strides = array<i32>} : memref<64x256xf32, #tpu.memory_space<vmem>>, vector<64x128xf32>,
    %c1 = arith.constant 1 : index
    %c0_7 = arith.constant 0 : index
    %7 = vector.load %arg2[%c1, %c0_7] : memref<2x128xf32, #tpu.memory_space<vmem>>, vector<1x128xf32>
    %8 = vector.shape_cast %7 : vector<1x128xf32> to vector<1x128xf32>
    %9 = vector.broadcast %8 : vector<1x128xf32> to vector<64x128xf32>
    %c0_8 = arith.constant 0 : index
    %c128 = arith.constant 128 : index
    %10 = vector.load %arg7[%c0_8, %c128] : memref<64x256xf32, #tpu.memory_space<vmem>>, vector<64x128xf32>
    tpu.vector_store %arg7[%c0_8, %c128], %9 {strides = array<i32>} : memref<64x256xf32, #tpu.memory_space<vmem>>, vector<64x128xf32>,
    %11 = tpu.iota {dimensions = array<i32: 1>} : vector<8x256xi32>
    %c128_i32 = arith.constant 128 : i32
    %c0_i32 = arith.constant 0 : i32
    %12 = arith.cmpi eq, %c128_i32, %c0_i32 : i32
    %c1_i32 = arith.constant 1 : i32
    %13 = arith.select %12, %c1_i32, %c128_i32 : i32
    %14 = vector.broadcast %13 : i32 to vector<8x256xi32>
    %15 = arith.remsi %11, %14 : vector<8x256xi32>
    %c0_i32_9 = arith.constant 0 : i32
    %16 = vector.broadcast %c0_i32_9 : i32 to vector<8x256xi32>
    %17 = arith.cmpi ne, %15, %16 : vector<8x256xi32>
    %c0_i32_10 = arith.constant 0 : i32
    %18 = vector.broadcast %c0_i32_10 : i32 to vector<8x256xi32>
    %19 = arith.cmpi slt, %15, %18 : vector<8x256xi32>
    %c0_i32_11 = arith.constant 0 : i32
    %20 = arith.cmpi slt, %13, %c0_i32_11 : i32
    %21 = vector.broadcast %20 : i1 to vector<8x256xi1>
    %22 = vector.broadcast %21 : vector<8x256xi1> to vector<8x256xi1>
    %23 = arith.xori %19, %22 : vector<8x256xi1>
    %24 = arith.andi %23, %17 : vector<8x256xi1>
    %25 = vector.broadcast %13 : i32 to vector<8x256xi32>
    %26 = arith.addi %15, %25 : vector<8x256xi32>
    %27 = arith.select %24, %26, %15 : vector<8x256xi1>, vector<8x256xi32>
    %c64_i32 = arith.constant 64 : i32
    %28 = vector.broadcast %c64_i32 : i32 to vector<8x256xi32>
    %29 = arith.cmpi sge, %27, %28 : vector<8x256xi32>
    %c96_i32 = arith.constant 96 : i32
    %30 = vector.broadcast %c96_i32 : i32 to vector<8x256xi32>
    %31 = arith.cmpi slt, %27, %30 : vector<8x256xi32>
    %32 = arith.andi %29, %31 : vector<8x256xi1>
    %cst_12 = arith.constant 1.000000e+00 : f32
    %cst_13 = arith.constant 5.000000e-01 : f32
    %33 = vector.broadcast %cst_12 : f32 to vector<8x256xf32>
    %34 = vector.broadcast %cst_13 : f32 to vector<8x256xf32>
    %35 = arith.select %32, %33, %34 : vector<8x256xi1>, vector<8x256xf32>
    %cst_14 = arith.constant 0.000000e+00 : f32
    %cst_15 = arith.constant 5.000000e-01 : f32
    %36 = vector.broadcast %cst_14 : f32 to vector<8x256xf32>
    %37 = vector.broadcast %cst_15 : f32 to vector<8x256xf32>
    %38 = arith.select %32, %36, %37 : vector<8x256xi1>, vector<8x256xf32>
    %c0_16 = arith.constant 0 : index
    %c0_17 = arith.constant 0 : index
    %39 = vector.load %arg3[%c0_16, %c0_17] : memref<64x256xbf16, #tpu.memory_space<vmem>>, vector<64x256xbf16>
    %cst_18 = arith.constant 0.000000e+00 : f32
    %40 = vector.broadcast %cst_18 : f32 to vector<8x32xf32>
    %cst_19 = arith.constant 0.000000e+00 : f32
    %41 = vector.broadcast %cst_19 : f32 to vector<8x32xf32>
    %cst_20 = arith.constant 0.000000e+00 : f32
    %42 = vector.broadcast %cst_20 : f32 to vector<8x32xf32>
    %cst_21 = arith.constant 0.000000e+00 : f32
    %43 = vector.broadcast %cst_21 : f32 to vector<8x32xf32>
    %44 = tpu.concatenate %40, %41 in 1 : vector<8x32xf32>, vector<8x32xf32> -> vector<8x64xf32>
    %45 = arith.truncf %44 : vector<8x64xf32> to vector<8x64xbf16>
    %cst_22 = arith.constant dense<0.000000e+00> : vector<8x256xf32>
    %46 = tpu.matmul %45, %39, %cst_22 {dimension_numbers = #tpu.dot_dimension_numbers<[1], [0], [0], [1], [0, 0, 1, 1], [], []>} : vector<8x64xbf16>, vector<64x256xbf16>, vector<8x256xf32> -> vector<8x256xf32>
    %c0_23 = arith.constant 0 : index
    %c0_24 = arith.constant 0 : index
    %47 = vector.load %arg7[%c0_23, %c0_24] : memref<64x256xf32, #tpu.memory_space<vmem>>, vector<8x256xf32>
    %48 = arith.addf %47, %46 : vector<8x256xf32>
    %49 = arith.mulf %48, %35 : vector<8x256xf32>
    %50 = math.tanh %49 : vector<8x256xf32>
    %51 = arith.mulf %50, %35 : vector<8x256xf32>
    %52 = arith.addf %51, %38 : vector<8x256xf32>
    %53 = vector.extract_strided_slice %52 {offsets = [0, 0], sizes = [8, 32], strides = [1, 1]} : vector<8x256xf32> to vector<8x32xf32>
    %54 = vector.extract_strided_slice %52 {offsets = [0, 32], sizes = [8, 32], strides = [1, 1]} : vector<8x256xf32> to vector<8x32xf32>
    %55 = vector.extract_strided_slice %52 {offsets = [0, 64], sizes = [8, 32], strides = [1, 1]} : vector<8x256xf32> to vector<8x32xf32>
    %56 = vector.extract_strided_slice %52 {offsets = [0, 96], sizes = [8, 32], strides = [1, 1]} : vector<8x256xf32> to vector<8x32xf32>
    %57 = arith.mulf %54, %42 : vector<8x32xf32>
    %58 = arith.mulf %53, %55 : vector<8x32xf32>
    %59 = arith.addf %57, %58 : vector<8x32xf32>
    %60 = math.tanh %59 : vector<8x32xf32>
    %61 = arith.mulf %56, %60 : vector<8x32xf32>
    %62 = tpu.concatenate %61, %41 in 1 : vector<8x32xf32>, vector<8x32xf32> -> vector<8x64xf32>
    %63 = arith.truncf %62 : vector<8x64xf32> to vector<8x64xbf16>
    %cst_25 = arith.constant dense<0.000000e+00> : vector<8x256xf32>
    %64 = tpu.matmul %63, %39, %cst_25 {dimension_numbers = #tpu.dot_dimension_numbers<[1], [0], [0], [1], [0, 0, 1, 1], [], []>} : vector<8x64xbf16>, vector<64x256xbf16>, vector<8x256xf32> -> vector<8x256xf32>
    %c8 = arith.constant 8 : index
    %c0_26 = arith.constant 0 : index
    %65 = vector.load %arg7[%c8, %c0_26] : memref<64x256xf32, #tpu.memory_space<vmem>>, vector<8x256xf32>
    %66 = arith.addf %65, %64 : vector<8x256xf32>
    %67 = arith.mulf %66, %35 : vector<8x256xf32>
    %68 = math.tanh %67 : vector<8x256xf32>
    %69 = arith.mulf %68, %35 : vector<8x256xf32>
    %70 = arith.addf %69, %38 : vector<8x256xf32>
    %71 = vector.extract_strided_slice %70 {offsets = [0, 0], sizes = [8, 32], strides = [1, 1]} : vector<8x256xf32> to vector<8x32xf32>
    %72 = vector.extract_strided_slice %70 {offsets = [0, 32], sizes = [8, 32], strides = [1, 1]} : vector<8x256xf32> to vector<8x32xf32>
    %73 = vector.extract_strided_slice %70 {offsets = [0, 64], sizes = [8, 32], strides = [1, 1]} : vector<8x256xf32> to vector<8x32xf32>
    %74 = vector.extract_strided_slice %70 {offsets = [0, 96], sizes = [8, 32], strides = [1, 1]} : vector<8x256xf32> to vector<8x32xf32>
    %75 = arith.mulf %72, %59 : vector<8x32xf32>
    %76 = arith.mulf %71, %73 : vector<8x32xf32>
    %77 = arith.addf %75, %76 : vector<8x32xf32>
    %78 = math.tanh %77 : vector<8x32xf32>
    %79 = arith.mulf %74, %78 : vector<8x32xf32>
    %80 = vector.extract_strided_slice %70 {offsets = [0, 128], sizes = [8, 32], strides = [1, 1]} : vector<8x256xf32> to vector<8x32xf32>
    %81 = vector.extract_strided_slice %70 {offsets = [0, 160], sizes = [8, 32], strides = [1, 1]} : vector<8x256xf32> to vector<8x32xf32>
    %82 = vector.extract_strided_slice %70 {offsets = [0, 192], sizes = [8, 32], strides = [1, 1]} : vector<8x256xf32> to vector<8x32xf32>
    %83 = vector.extract_strided_slice %70 {offsets = [0, 224], sizes = [8, 32], strides = [1, 1]} : vector<8x256xf32> to vector<8x32xf32>
    %84 = arith.mulf %81, %43 : vector<8x32xf32>
    %85 = arith.mulf %80, %82 : vector<8x32xf32>
    %86 = arith.addf %84, %85 : vector<8x32xf32>
    %87 = math.tanh %86 : vector<8x32xf32>
    %88 = arith.mulf %83, %87 : vector<8x32xf32>
    %89 = tpu.concatenate %79, %88 in 1 : vector<8x32xf32>, vector<8x32xf32> -> vector<8x64xf32>
    %90 = arith.truncf %89 : vector<8x64xf32> to vector<8x64xbf16>
    %cst_27 = arith.constant dense<0.000000e+00> : vector<8x256xf32>
    %91 = tpu.matmul %90, %39, %cst_27 {dimension_numbers = #tpu.dot_dimension_numbers<[1], [0], [0], [1], [0, 0, 1, 1], [], []>} : vector<8x64xbf16>, vector<64x256xbf16>, vector<8x256xf32> -> vector<8x256xf32>
    %c16 = arith.constant 16 : index
    %c0_28 = arith.constant 0 : index
    %92 = vector.load %arg7[%c16, %c0_28] : memref<64x256xf32, #tpu.memory_space<vmem>>, vector<8x256xf32>
    %93 = arith.addf %92, %91 : vector<8x256xf32>
    %94 = arith.mulf %93, %35 : vector<8x256xf32>
    %95 = math.tanh %94 : vector<8x256xf32>
    %96 = arith.mulf %95, %35 : vector<8x256xf32>
    %97 = arith.addf %96, %38 : vector<8x256xf32>
    %98 = vector.extract_strided_slice %97 {offsets = [0, 0], sizes = [8, 32], strides = [1, 1]} : vector<8x256xf32> to vector<8x32xf32>
    %99 = vector.extract_strided_slice %97 {offsets = [0, 32], sizes = [8, 32], strides = [1, 1]} : vector<8x256xf32> to vector<8x32xf32>
    %100 = vector.extract_strided_slice %97 {offsets = [0, 64], sizes = [8, 32], strides = [1, 1]} : vector<8x256xf32> to vector<8x32xf32>
    %101 = vector.extract_strided_slice %97 {offsets = [0, 96], sizes = [8, 32], strides = [1, 1]} : vector<8x256xf32> to vector<8x32xf32>
    %102 = arith.mulf %99, %77 : vector<8x32xf32>
    %103 = arith.mulf %98, %100 : vector<8x32xf32>
    %104 = arith.addf %102, %103 : vector<8x32xf32>
    %105 = math.tanh %104 : vector<8x32xf32>
    %106 = arith.mulf %101, %105 : vector<8x32xf32>
    %107 = vector.extract_strided_slice %97 {offsets = [0, 128], sizes = [8, 32], strides = [1, 1]} : vector<8x256xf32> to vector<8x32xf32>
    %108 = vector.extract_strided_slice %97 {offsets = [0, 160], sizes = [8, 32], strides = [1, 1]} : vector<8x256xf32> to vector<8x32xf32>
    %109 = vector.extract_strided_slice %97 {offsets = [0, 192], sizes = [8, 32], strides = [1, 1]} : vector<8x256xf32> to vector<8x32xf32>
    %110 = vector.extract_strided_slice %97 {offsets = [0, 224], sizes = [8, 32], strides = [1, 1]} : vector<8x256xf32> to vector<8x32xf32>
    %111 = arith.mulf %108, %86 : vector<8x32xf32>
    %112 = arith.mulf %107, %109 : vector<8x32xf32>
    %113 = arith.addf %111, %112 : vector<8x32xf32>
    %114 = math.tanh %113 : vector<8x32xf32>
    %115 = arith.mulf %110, %114 : vector<8x32xf32>
    %116 = tpu.concatenate %106, %115 in 1 : vector<8x32xf32>, vector<8x32xf32> -> vector<8x64xf32>
    %117 = arith.truncf %116 : vector<8x64xf32> to vector<8x64xbf16>
    %cst_29 = arith.constant dense<0.000000e+00> : vector<8x256xf32>
    %118 = tpu.matmul %117, %39, %cst_29 {dimension_numbers = #tpu.dot_dimension_numbers<[1], [0], [0], [1], [0, 0, 1, 1], [], []>} : vector<8x64xbf16>, vector<64x256xbf16>, vector<8x256xf32> -> vector<8x256xf32>
    %c24 = arith.constant 24 : index
    %c0_30 = arith.constant 0 : index
    %119 = vector.load %arg7[%c24, %c0_30] : memref<64x256xf32, #tpu.memory_space<vmem>>, vector<8x256xf32>
    %120 = arith.addf %119, %118 : vector<8x256xf32>
    %121 = arith.mulf %120, %35 : vector<8x256xf32>
    %122 = math.tanh %121 : vector<8x256xf32>
    %123 = arith.mulf %122, %35 : vector<8x256xf32>
    %124 = arith.addf %123, %38 : vector<8x256xf32>
    %125 = vector.extract_strided_slice %124 {offsets = [0, 0], sizes = [8, 32], strides = [1, 1]} : vector<8x256xf32> to vector<8x32xf32>
    %126 = vector.extract_strided_slice %124 {offsets = [0, 32], sizes = [8, 32], strides = [1, 1]} : vector<8x256xf32> to vector<8x32xf32>
    %127 = vector.extract_strided_slice %124 {offsets = [0, 64], sizes = [8, 32], strides = [1, 1]} : vector<8x256xf32> to vector<8x32xf32>
    %128 = vector.extract_strided_slice %124 {offsets = [0, 96], sizes = [8, 32], strides = [1, 1]} : vector<8x256xf32> to vector<8x32xf32>
    %129 = arith.mulf %126, %104 : vector<8x32xf32>
    %130 = arith.mulf %125, %127 : vector<8x32xf32>
    %131 = arith.addf %129, %130 : vector<8x32xf32>
    %132 = math.tanh %131 : vector<8x32xf32>
    %133 = arith.mulf %128, %132 : vector<8x32xf32>
    %134 = vector.extract_strided_slice %124 {offsets = [0, 128], sizes = [8, 32], strides = [1, 1]} : vector<8x256xf32> to vector<8x32xf32>
    %135 = vector.extract_strided_slice %124 {offsets = [0, 160], sizes = [8, 32], strides = [1, 1]} : vector<8x256xf32> to vector<8x32xf32>
    %136 = vector.extract_strided_slice %124 {offsets = [0, 192], sizes = [8, 32], strides = [1, 1]} : vector<8x256xf32> to vector<8x32xf32>
    %137 = vector.extract_strided_slice %124 {offsets = [0, 224], sizes = [8, 32], strides = [1, 1]} : vector<8x256xf32> to vector<8x32xf32>
    %138 = arith.mulf %135, %113 : vector<8x32xf32>
    %139 = arith.mulf %134, %136 : vector<8x32xf32>
    %140 = arith.addf %138, %139 : vector<8x32xf32>
    %141 = math.tanh %140 : vector<8x32xf32>
    %142 = arith.mulf %137, %141 : vector<8x32xf32>
    %143 = tpu.concatenate %133, %142 in 1 : vector<8x32xf32>, vector<8x32xf32> -> vector<8x64xf32>
    %144 = arith.truncf %143 : vector<8x64xf32> to vector<8x64xbf16>
    %cst_31 = arith.constant dense<0.000000e+00> : vector<8x256xf32>
    %145 = tpu.matmul %144, %39, %cst_31 {dimension_numbers = #tpu.dot_dimension_numbers<[1], [0], [0], [1], [0, 0, 1, 1], [], []>} : vector<8x64xbf16>, vector<64x256xbf16>, vector<8x256xf32> -> vector<8x256xf32>
    %c32 = arith.constant 32 : index
    %c0_32 = arith.constant 0 : index
    %146 = vector.load %arg7[%c32, %c0_32] : memref<64x256xf32, #tpu.memory_space<vmem>>, vector<8x256xf32>
    %147 = arith.addf %146, %145 : vector<8x256xf32>
    %148 = arith.mulf %147, %35 : vector<8x256xf32>
    %149 = math.tanh %148 : vector<8x256xf32>
    %150 = arith.mulf %149, %35 : vector<8x256xf32>
    %151 = arith.addf %150, %38 : vector<8x256xf32>
    %152 = vector.extract_strided_slice %151 {offsets = [0, 0], sizes = [8, 32], strides = [1, 1]} : vector<8x256xf32> to vector<8x32xf32>
    %153 = vector.extract_strided_slice %151 {offsets = [0, 32], sizes = [8, 32], strides = [1, 1]} : vector<8x256xf32> to vector<8x32xf32>
    %154 = vector.extract_strided_slice %151 {offsets = [0, 64], sizes = [8, 32], strides = [1, 1]} : vector<8x256xf32> to vector<8x32xf32>
    %155 = vector.extract_strided_slice %151 {offsets = [0, 96], sizes = [8, 32], strides = [1, 1]} : vector<8x256xf32> to vector<8x32xf32>
    %156 = arith.mulf %153, %131 : vector<8x32xf32>
    %157 = arith.mulf %152, %154 : vector<8x32xf32>
    %158 = arith.addf %156, %157 : vector<8x32xf32>
    %159 = math.tanh %158 : vector<8x32xf32>
    %160 = arith.mulf %155, %159 : vector<8x32xf32>
    %161 = vector.extract_strided_slice %151 {offsets = [0, 128], sizes = [8, 32], strides = [1, 1]} : vector<8x256xf32> to vector<8x32xf32>
    %162 = vector.extract_strided_slice %151 {offsets = [0, 160], sizes = [8, 32], strides = [1, 1]} : vector<8x256xf32> to vector<8x32xf32>
    %163 = vector.extract_strided_slice %151 {offsets = [0, 192], sizes = [8, 32], strides = [1, 1]} : vector<8x256xf32> to vector<8x32xf32>
    %164 = vector.extract_strided_slice %151 {offsets = [0, 224], sizes = [8, 32], strides = [1, 1]} : vector<8x256xf32> to vector<8x32xf32>
    %165 = arith.mulf %162, %140 : vector<8x32xf32>
    %166 = arith.mulf %161, %163 : vector<8x32xf32>
    %167 = arith.addf %165, %166 : vector<8x32xf32>
    %168 = math.tanh %167 : vector<8x32xf32>
    %169 = arith.mulf %164, %168 : vector<8x32xf32>
    %170 = tpu.concatenate %160, %169 in 1 : vector<8x32xf32>, vector<8x32xf32> -> vector<8x64xf32>
    %171 = arith.truncf %170 : vector<8x64xf32> to vector<8x64xbf16>
    %cst_33 = arith.constant dense<0.000000e+00> : vector<8x256xf32>
    %172 = tpu.matmul %171, %39, %cst_33 {dimension_numbers = #tpu.dot_dimension_numbers<[1], [0], [0], [1], [0, 0, 1, 1], [], []>} : vector<8x64xbf16>, vector<64x256xbf16>, vector<8x256xf32> -> vector<8x256xf32>
    %c40 = arith.constant 40 : index
    %c0_34 = arith.constant 0 : index
    %173 = vector.load %arg7[%c40, %c0_34] : memref<64x256xf32, #tpu.memory_space<vmem>>, vector<8x256xf32>
    %174 = arith.addf %173, %172 : vector<8x256xf32>
    %175 = arith.mulf %174, %35 : vector<8x256xf32>
    %176 = math.tanh %175 : vector<8x256xf32>
    %177 = arith.mulf %176, %35 : vector<8x256xf32>
    %178 = arith.addf %177, %38 : vector<8x256xf32>
    %179 = vector.extract_strided_slice %178 {offsets = [0, 0], sizes = [8, 32], strides = [1, 1]} : vector<8x256xf32> to vector<8x32xf32>
    %180 = vector.extract_strided_slice %178 {offsets = [0, 32], sizes = [8, 32], strides = [1, 1]} : vector<8x256xf32> to vector<8x32xf32>
    %181 = vector.extract_strided_slice %178 {offsets = [0, 64], sizes = [8, 32], strides = [1, 1]} : vector<8x256xf32> to vector<8x32xf32>
    %182 = vector.extract_strided_slice %178 {offsets = [0, 96], sizes = [8, 32], strides = [1, 1]} : vector<8x256xf32> to vector<8x32xf32>
    %183 = arith.mulf %180, %158 : vector<8x32xf32>
    %184 = arith.mulf %179, %181 : vector<8x32xf32>
    %185 = arith.addf %183, %184 : vector<8x32xf32>
    %186 = math.tanh %185 : vector<8x32xf32>
    %187 = arith.mulf %182, %186 : vector<8x32xf32>
    %188 = vector.extract_strided_slice %178 {offsets = [0, 128], sizes = [8, 32], strides = [1, 1]} : vector<8x256xf32> to vector<8x32xf32>
    %189 = vector.extract_strided_slice %178 {offsets = [0, 160], sizes = [8, 32], strides = [1, 1]} : vector<8x256xf32> to vector<8x32xf32>
    %190 = vector.extract_strided_slice %178 {offsets = [0, 192], sizes = [8, 32], strides = [1, 1]} : vector<8x256xf32> to vector<8x32xf32>
    %191 = vector.extract_strided_slice %178 {offsets = [0, 224], sizes = [8, 32], strides = [1, 1]} : vector<8x256xf32> to vector<8x32xf32>
    %192 = arith.mulf %189, %167 : vector<8x32xf32>
    %193 = arith.mulf %188, %190 : vector<8x32xf32>
    %194 = arith.addf %192, %193 : vector<8x32xf32>
    %195 = math.tanh %194 : vector<8x32xf32>
    %196 = arith.mulf %191, %195 : vector<8x32xf32>
    %197 = tpu.concatenate %187, %196 in 1 : vector<8x32xf32>, vector<8x32xf32> -> vector<8x64xf32>
    %198 = arith.truncf %197 : vector<8x64xf32> to vector<8x64xbf16>
    %cst_35 = arith.constant dense<0.000000e+00> : vector<8x256xf32>
    %199 = tpu.matmul %198, %39, %cst_35 {dimension_numbers = #tpu.dot_dimension_numbers<[1], [0], [0], [1], [0, 0, 1, 1], [], []>} : vector<8x64xbf16>, vector<64x256xbf16>, vector<8x256xf32> -> vector<8x256xf32>
    %c48 = arith.constant 48 : index
    %c0_36 = arith.constant 0 : index
    %200 = vector.load %arg7[%c48, %c0_36] : memref<64x256xf32, #tpu.memory_space<vmem>>, vector<8x256xf32>
    %201 = arith.addf %200, %199 : vector<8x256xf32>
    %202 = arith.mulf %201, %35 : vector<8x256xf32>
    %203 = math.tanh %202 : vector<8x256xf32>
    %204 = arith.mulf %203, %35 : vector<8x256xf32>
    %205 = arith.addf %204, %38 : vector<8x256xf32>
    %206 = vector.extract_strided_slice %205 {offsets = [0, 0], sizes = [8, 32], strides = [1, 1]} : vector<8x256xf32> to vector<8x32xf32>
    %207 = vector.extract_strided_slice %205 {offsets = [0, 32], sizes = [8, 32], strides = [1, 1]} : vector<8x256xf32> to vector<8x32xf32>
    %208 = vector.extract_strided_slice %205 {offsets = [0, 64], sizes = [8, 32], strides = [1, 1]} : vector<8x256xf32> to vector<8x32xf32>
    %209 = vector.extract_strided_slice %205 {offsets = [0, 96], sizes = [8, 32], strides = [1, 1]} : vector<8x256xf32> to vector<8x32xf32>
    %210 = arith.mulf %207, %185 : vector<8x32xf32>
    %211 = arith.mulf %206, %208 : vector<8x32xf32>
    %212 = arith.addf %210, %211 : vector<8x32xf32>
    %213 = math.tanh %212 : vector<8x32xf32>
    %214 = arith.mulf %209, %213 : vector<8x32xf32>
    %215 = vector.extract_strided_slice %205 {offsets = [0, 128], sizes = [8, 32], strides = [1, 1]} : vector<8x256xf32> to vector<8x32xf32>
    %216 = vector.extract_strided_slice %205 {offsets = [0, 160], sizes = [8, 32], strides = [1, 1]} : vector<8x256xf32> to vector<8x32xf32>
    %217 = vector.extract_strided_slice %205 {offsets = [0, 192], sizes = [8, 32], strides = [1, 1]} : vector<8x256xf32> to vector<8x32xf32>
    %218 = vector.extract_strided_slice %205 {offsets = [0, 224], sizes = [8, 32], strides = [1, 1]} : vector<8x256xf32> to vector<8x32xf32>
    %219 = arith.mulf %216, %194 : vector<8x32xf32>
    %220 = arith.mulf %215, %217 : vector<8x32xf32>
    %221 = arith.addf %219, %220 : vector<8x32xf32>
    %222 = math.tanh %221 : vector<8x32xf32>
    %223 = arith.mulf %218, %222 : vector<8x32xf32>
    %224 = tpu.concatenate %214, %223 in 1 : vector<8x32xf32>, vector<8x32xf32> -> vector<8x64xf32>
    %225 = arith.truncf %224 : vector<8x64xf32> to vector<8x64xbf16>
    %cst_37 = arith.constant dense<0.000000e+00> : vector<8x256xf32>
    %226 = tpu.matmul %225, %39, %cst_37 {dimension_numbers = #tpu.dot_dimension_numbers<[1], [0], [0], [1], [0, 0, 1, 1], [], []>} : vector<8x64xbf16>, vector<64x256xbf16>, vector<8x256xf32> -> vector<8x256xf32>
    %c56 = arith.constant 56 : index
    %c0_38 = arith.constant 0 : index
    %227 = vector.load %arg7[%c56, %c0_38] : memref<64x256xf32, #tpu.memory_space<vmem>>, vector<8x256xf32>
    %228 = arith.addf %227, %226 : vector<8x256xf32>
    %229 = arith.mulf %228, %35 : vector<8x256xf32>
    %230 = math.tanh %229 : vector<8x256xf32>
    %231 = arith.mulf %230, %35 : vector<8x256xf32>
    %232 = arith.addf %231, %38 : vector<8x256xf32>
    %233 = vector.extract_strided_slice %232 {offsets = [0, 0], sizes = [8, 32], strides = [1, 1]} : vector<8x256xf32> to vector<8x32xf32>
    %234 = vector.extract_strided_slice %232 {offsets = [0, 32], sizes = [8, 32], strides = [1, 1]} : vector<8x256xf32> to vector<8x32xf32>
    %235 = vector.extract_strided_slice %232 {offsets = [0, 64], sizes = [8, 32], strides = [1, 1]} : vector<8x256xf32> to vector<8x32xf32>
    %236 = vector.extract_strided_slice %232 {offsets = [0, 96], sizes = [8, 32], strides = [1, 1]} : vector<8x256xf32> to vector<8x32xf32>
    %237 = arith.mulf %234, %212 : vector<8x32xf32>
    %238 = arith.mulf %233, %235 : vector<8x32xf32>
    %239 = arith.addf %237, %238 : vector<8x32xf32>
    %240 = math.tanh %239 : vector<8x32xf32>
    %241 = arith.mulf %236, %240 : vector<8x32xf32>
    %242 = vector.extract_strided_slice %232 {offsets = [0, 128], sizes = [8, 32], strides = [1, 1]} : vector<8x256xf32> to vector<8x32xf32>
    %243 = vector.extract_strided_slice %232 {offsets = [0, 160], sizes = [8, 32], strides = [1, 1]} : vector<8x256xf32> to vector<8x32xf32>
    %244 = vector.extract_strided_slice %232 {offsets = [0, 192], sizes = [8, 32], strides = [1, 1]} : vector<8x256xf32> to vector<8x32xf32>
    %245 = vector.extract_strided_slice %232 {offsets = [0, 224], sizes = [8, 32], strides = [1, 1]} : vector<8x256xf32> to vector<8x32xf32>
    %246 = arith.mulf %243, %221 : vector<8x32xf32>
    %247 = arith.mulf %242, %244 : vector<8x32xf32>
    %248 = arith.addf %246, %247 : vector<8x32xf32>
    %249 = math.tanh %248 : vector<8x32xf32>
    %250 = arith.mulf %245, %249 : vector<8x32xf32>
    %251 = tpu.concatenate %241, %250 in 1 : vector<8x32xf32>, vector<8x32xf32> -> vector<8x64xf32>
    %252 = arith.truncf %251 : vector<8x64xf32> to vector<8x64xbf16>
    %cst_39 = arith.constant dense<0.000000e+00> : vector<8x256xf32>
    %253 = tpu.matmul %252, %39, %cst_39 {dimension_numbers = #tpu.dot_dimension_numbers<[1], [0], [0], [1], [0, 0, 1, 1], [], []>} : vector<8x64xbf16>, vector<64x256xbf16>, vector<8x256xf32> -> vector<8x256xf32>
    %c56_40 = arith.constant 56 : index
    %c0_41 = arith.constant 0 : index
    %254 = vector.load %arg7[%c56_40, %c0_41] : memref<64x256xf32, #tpu.memory_space<vmem>>, vector<8x256xf32>
    %255 = arith.addf %254, %253 : vector<8x256xf32>
    %256 = arith.mulf %255, %35 : vector<8x256xf32>
    %257 = math.tanh %256 : vector<8x256xf32>
    %258 = arith.mulf %257, %35 : vector<8x256xf32>
    %259 = arith.addf %258, %38 : vector<8x256xf32>
    %260 = vector.extract_strided_slice %259 {offsets = [0, 128], sizes = [8, 32], strides = [1, 1]} : vector<8x256xf32> to vector<8x32xf32>
    %261 = vector.extract_strided_slice %259 {offsets = [0, 160], sizes = [8, 32], strides = [1, 1]} : vector<8x256xf32> to vector<8x32xf32>
    %262 = vector.extract_strided_slice %259 {offsets = [0, 192], sizes = [8, 32], strides = [1, 1]} : vector<8x256xf32> to vector<8x32xf32>
    %263 = vector.extract_strided_slice %259 {offsets = [0, 224], sizes = [8, 32], strides = [1, 1]} : vector<8x256xf32> to vector<8x32xf32>
    %264 = arith.mulf %261, %248 : vector<8x32xf32>
    %265 = arith.mulf %260, %262 : vector<8x32xf32>
    %266 = arith.addf %264, %265 : vector<8x32xf32>
    %267 = math.tanh %266 : vector<8x32xf32>
    %268 = arith.mulf %263, %267 : vector<8x32xf32>
    %269 = arith.truncf %268 : vector<8x32xf32> to vector<8x32xbf16>
    %c0_42 = arith.constant 0 : index
    %c0_43 = arith.constant 0 : index
    %270 = vector.load %arg4[%c0_42, %c0_43] : memref<32x8xbf16, #tpu.memory_space<vmem>>, vector<32x8xbf16>
    %cst_44 = arith.constant dense<0.000000e+00> : vector<8x8xf32>
    %271 = tpu.matmul %269, %270, %cst_44 {dimension_numbers = #tpu.dot_dimension_numbers<[1], [0], [0], [1], [0, 0, 1, 1], [], []>} : vector<8x32xbf16>, vector<32x8xbf16>, vector<8x8xf32> -> vector<8x8xf32>
    %c0_45 = arith.constant 0 : index
    %c0_46 = arith.constant 0 : index
    %272 = vector.load %arg5[%c0_45, %c0_46] : memref<1x8xf32, #tpu.memory_space<vmem>>, vector<1x8xf32>
    %273 = vector.broadcast %272 : vector<1x8xf32> to vector<8x8xf32>
    %274 = arith.addf %271, %273 : vector<8x8xf32>
    %c0_47 = arith.constant 0 : index
    %c0_48 = arith.constant 0 : index
    %275 = vector.load %arg6[%c0_47, %c0_48] : memref<8x8xf32, #tpu.memory_space<vmem>>, vector<8x8xf32>
    tpu.vector_store %arg6[%c0_47, %c0_48], %274 {strides = array<i32>} : memref<8x8xf32, #tpu.memory_space<vmem>>, vector<8x8xf32>,
    return
  }
}

</mosaic_0001>

<bundles_post_ra>
// kernel: task_config_network.1
= control target key start
LH: loop header
LB: loop body
LE: loop exit
PB: predicated region body
PF: predicated region fallthrough
CT: control target
= control target key end

     0   :  { %v1312_v1 = vmov 0   ;;  %vm65_vm0 = vcmask 130048   ;;  %v1313_v12 = vmov 0.0|0.0   ;;  %v164_v13 = vlaneseq  ;;  %s1315_s19 = smov 64   ;;  %s1316_s20 = smov 32   ;;  %s1717_s3 = inlined_call_operand.vmem [shape: bf16[64,256], index: 3, kind: input, shape index: {}]   ;;  %s1718_s1 = inlined_call_operand.vmem [shape: bf16[16,128], index: 1, kind: input, shape index: {}]   ;;  %s1719_s0 = inlined_call_operand.vmem [shape: bf16[64,16], index: 0, kind: input, shape index: {}]   ;;  %s1720_s2 = inlined_call_operand.vmem [shape: f32[2,128], index: 2, kind: input, shape index: {}]   ;;  %s1721_s4 = inlined_call_operand.vmem [shape: bf16[32,8], index: 4, kind: input, shape index: {}]   ;;  %s1722_s5 = inlined_call_operand.vmem [shape: f32[1,8], index: 5, kind: input, shape index: {}]   ;;  %s1723_s6 = inlined_call_operand.vmem [shape: f32[8,8], index: 6, kind: output, shape index: {}]  }
   0x1   :  { %v1357_v0 = vld [vmem:[%s1717_s3 + $0x34] ss:$8 sps:$4 sm:$0xff]   ;;  %286 = vmatprep.mubr.bf16.mxu1 %v1312_v1  ;;  %v1363_v2 = vld [vmem:[%s1717_s3 + $0x30] ss:$8 sps:$4 sm:$0xff]   ;;  %v1232_v3 = vld [vmem:[%s1718_s1] sm:$0xff]   ;;  %v1314_v19 = vmov 0.5  }
   0x2   :  { %262 = vmatprep.subr.bf16.mxu1 %v1357_v0  ;;  %v1373_v4 = vld [vmem:[%s1717_s3 + $0x24] ss:$8 sps:$4 sm:$0xff]   ;;  %1204 = vmatprep.subr.bf16.mxu0 %v1232_v3  ;;  %v1381_v6 = vld [vmem:[%s1717_s3 + $0x20] ss:$8 sps:$4 sm:$0xff]   ;;  %v1391_v8 = vld [vmem:[%s1717_s3 + $0x14] ss:$8 sps:$4 sm:$0xff]  }
   0x3   :  { %263 = vmatpush1.bf16.msra.mxu1 %v1363_v2  ;;  %v1235_v5 = vld [vmem:[%s1719_s0] sm:$0xff]   ;;  %1205 = vmatpush3.bf16.msra.mxu0 %v1232_v3  ;;  %v1237_v7 = vld [vmem:[%s1719_s0 + $0x8] sm:$0xff]   ;;  %v1398_v9 = vld [vmem:[%s1717_s3 + $0x10] ss:$8 sps:$4 sm:$0xff]   ;;  %v165_v14 = vand.u32 127, %v164_v13  ;;  %vm321_vm4 = vcmask 261120  }
   0x4   :  { %264 = vmatprep.subr.bf16.mxu1 %v1373_v4  ;;  %1206 = vmatprep.mubr.msk.bf16.mxu0 %vm65_vm0, %v1235_v5  ;;  %v1405_v10 = vld [vmem:[%s1717_s3 + $0x4] ss:$8 sps:$4 sm:$0xff]   ;;  %v1413_v11 = vld [vmem:[%s1717_s3] ss:$8 sps:$4 sm:$0xff]   ;;  %v1244_v36 = vld [vmem:[%s1719_s0 + $0x10] sm:$0xff]   ;;  %vm250_vm5 = vcmask 523264  }
   0x5   :  { %335 = vmatprep.subr.bf16.mxu0 %v1357_v0  ;;  %vm191_vm1 = vcmp.ge.s32.totalorder %v165_v14, 64  ;;  %vm193_vm2 = vcmp.lt.s32.totalorder %v165_v14, 96  ;;  %v1438_v16 = vld [vmem:[%s1720_s2] ss:$0 sm:$0xff]  ;;  %v1245_v37 = vld [vmem:[%s1719_s0 + $0x18] sm:$0xff]   ;;  %v166_v47 = vadd.s32 128, %v165_v14 }
   0x6   :  { %1207 = vmatmul.mubr.msk.bf16.vlgmr.msra.gmra.mxu0 %vm65_vm0, %v1237_v7  ;;  %vm195_vm3 = vmand %vm191_vm1, %vm193_vm2  ;;  %v1503_v56 = vld [vmem:[%s1720_s2 + $0x1] ss:$0 sm:$0xff]  ;;  %vm1318_vm9 = vmmov 0   ;;  %vm1159_vm10 = vcmask 64512  }
   0x7   :  { %265 = vmatpush1.bf16.msra.mxu1 %v1381_v6  ;;  %336 = vmatpush1.bf16.msra.mxu0 %v1363_v2  ;;  %v1442_v20 = vsel %vm195_vm3, 1.0, %v1314_v19  ;;  %v1446_v28 = vsel %vm195_vm3, 0.0, %v1314_v19  ;;  %v178_v49 = vand.u32 127, %v166_v47 }
   0x8   :  { %266 = vmatprep.subr.bf16.mxu1 %v1391_v8  ;;  %337 = vmatprep.subr.bf16.mxu0 %v1373_v4 }
   0x9   :  { %1210 = vmatprep.mubr.msk.bf16.mxu0 %vm65_vm0, %v1244_v36  ;;  %vm1485_vm6 = vcmp.ge.s32.totalorder %v178_v49, 64  ;;  %vm1489_vm7 = vcmp.lt.s32.totalorder %v178_v49, 96 }
   0xa   :  { %vm196_vm8 = vmand %vm1485_vm6, %vm1489_vm7 }
   0xb   :  { %267 = vmatpush1.bf16.msra.mxu1 %v1398_v9  ;;  %338 = vmatpush1.bf16.msra.mxu0 %v1381_v6  ;;  %v1511_v58 = vsel %vm196_vm8, 1.0, %v1314_v19  ;;  %v1523_v13 = vsel %vm196_vm8, 0.0, %v1314_v19 }
   0xc   :  { %268 = vmatprep.subr.bf16.mxu1 %v1405_v10  ;;  %339 = vmatprep.subr.bf16.mxu0 %v1391_v8 }
   0xe   :  { %1211 = vmatmul.mubr.msk.bf16.gmra.mxu0 %vm65_vm0, %v1245_v37 }
   0xf   :  { %269 = vmatpush1.bf16.msra.mxu1 %v1413_v11  ;;  %340 = vmatpush1.bf16.msra.mxu0 %v1398_v9 }
  0x10   :  { %435 = vmatprep.subr.bf16.mxu1 %v1357_v0  ;;  %341 = vmatprep.subr.bf16.mxu0 %v1405_v10 }
  0x11   :  { %359 = vmatprep.mubr.bf16.mxu0 %v1312_v1 }
  0x12   :  { %287 = vmatmul.mubr.bf16.vlgmr.msra.gmra.mxu1 %v1313_v12 }
  0x13   :  { %436 = vmatpush1.bf16.msra.mxu1 %v1363_v2  ;;  %459 = vmatprep.mubr.bf16.mxu1 %v1312_v1 }
  0x14   :  { %437 = vmatprep.subr.bf16.mxu1 %v1373_v4  ;;  %342 = vmatpush1.bf16.msra.mxu0 %v1413_v11 }
  0x15   :  { %535 = vmatprep.subr.bf16.mxu0 %v1357_v0 }
  0x17   :  { %438 = vmatpush1.bf16.msra.mxu1 %v1381_v6 }
  0x18   :  { %439 = vmatprep.subr.bf16.mxu1 %v1391_v8 }
  0x1b   :  { %440 = vmatpush1.bf16.msra.mxu1 %v1398_v9 }
  0x1c   :  { %441 = vmatprep.subr.bf16.mxu1 %v1405_v10 }
  0x1f   :  { %442 = vmatpush1.bf16.msra.mxu1 %v1413_v11 }
  0x20   :  { %635 = vmatprep.subr.bf16.mxu1 %v1357_v0 }
  0xc6   :  { %v1433_v15 = vpop.f32.mrf.mxu0 }
  0xc8   :  { %v112_v17 = vpop.f32.mrf.mxu0 }
  0xc9   :  { %v113_v18 = vadd.f32 %v1438_v16, %v112_v17 }
  0xca   :  { %v1477_v44 = vpop.f32.mrf.mxu0 }
  0xcc   :  { %v115_v45 = vpop.f32.mrf.mxu0 }
  0xcd   :  { %v116_v54 = vadd.f32 %v1438_v16, %v115_v45 }
  0xce   :  { %v1479_v46 = vpop.f32.mrf.mxu0 }
  0xd0   :  { %v1481_v48 = vpop.f32.mrf.mxu0 }
  0xd2   :  { %v288_v21 = vpop.f32.mrf.mxu1  ;;  %v1483_v50 = vpop.f32.mrf.mxu0 }
  0xd3   :  { %v295_v22 = vadd.f32 %v288_v21, %v113_v18 }
  0xd4   :  { %v290_v23 = vpop.f32.mrf.mxu1  ;;  %v1493_v53 = vpop.f32.mrf.mxu0 }
  0xd5   :  { %v296_v24 = vmul.f32 %v295_v22, %v1442_v20 }
  0xd6   :  { %v291_v25 = vpop.f32.mrf.mxu1 }
  0xd7   :  { %1248 = vtanh.f32 %v296_v24 }
  0xd8   :  { %v292_v26 = vpop.f32.mrf.mxu1 }
  0xe4   :  { %v1249_v27 = vpop.eup %1248 }
  0xe5   :  { %v298_v29 = vmul.f32 %v1249_v27, %v1442_v20 }
  0xe7   :  { %v299_v30 = vadd.f32 %v298_v29, %v1446_v28 }
  0xe9   :  { %302 = vrot.lane.b32.xlu0 %v299_v30, %s1315_s19  ;;  %v300_v33 = vmul.f32 0.0, %v299_v30 }
 0x15b   :  { %v303_v31 = vpop.permute.xlu0 %302 }
 0x15c   :  { %v305_v32 = vmul.f32 %v303_v31, %v299_v30 }
 0x15e   :  { %307 = vrot.lane.b32.xlu0 %v305_v32, %s1316_s20 }
 0x1d0   :  { %v308_v34 = vpop.permute.xlu0 %307 }
 0x1d1   :  { %v1452_v35 = vadd.f32 %v308_v34, %v300_v33 }
 0x1d3   :  { %1250 = vtanh.f32 %v1452_v35 }
 0x1e0   :  { %v1251_v38 = vpop.eup %1250 }
 0x1e1   :  { %313 = vrot.lane.b32.xlu1 %v1251_v38, %s1315_s19 }
 0x253   :  { %v314_v39 = vpop.permute.xlu1 %313 }
 0x254   :  { %v316_v40 = vmul.f32 %v314_v39, %v299_v30 }
 0x256   :  { %318 = vrot.lane.b32.xlu1 %v316_v40, %s1316_s20 }
 0x2c8   :  { %v319_v41 = vpop.permute.xlu1 %318 }
 0x2c9   :  { %v322_v42 = vsel %vm321_vm4, %v319_v41, 0.0  ;;  %v121_v41 = vadd.f32 %v1433_v15, %v1438_v16 }
 0x2ca   :  { %v323_v43 = vpack.c.bf16 %v322_v42, %v322_v42 }
 0x2cc   :  { %1184 = vmatmul.mubr.msk.bf16.vlgmr.msra.gmra.mxu0 %vm250_vm5, %v323_v43 }
 0x2cd   :  { %536 = vmatpush1.bf16.msra.mxu0 %v1363_v2  ;;  %559 = vmatprep.mubr.bf16.mxu0 %v1312_v1 }
 0x2ce   :  { %537 = vmatprep.subr.bf16.mxu0 %v1373_v4 }
 0x2d1   :  { %538 = vmatpush1.bf16.msra.mxu0 %v1381_v6 }
 0x2d2   :  { %539 = vmatprep.subr.bf16.mxu0 %v1391_v8 }
 0x2d5   :  { %540 = vmatpush1.bf16.msra.mxu0 %v1398_v9 }
 0x2d6   :  { %541 = vmatprep.subr.bf16.mxu0 %v1405_v10 }
 0x2d9   :  { %542 = vmatpush1.bf16.msra.mxu0 %v1413_v11 }
 0x2da   :  { %735 = vmatprep.subr.bf16.mxu0 %v1357_v0 }
 0x38c   :  { %v361_v55 = vpop.f32.mrf.mxu0 }
 0x38d   :  { %v370_v57 = vadd.f32 %v361_v55, %v116_v54 }
 0x38e   :  { %v363_v59 = vpop.f32.mrf.mxu0 }
 0x38f   :  { %v372_v60 = vmul.f32 %v370_v57, %v1442_v20  ;;  %v371_v61 = vadd.f32 %v1503_v56, %v363_v59 }
 0x390   :  { %v365_v62 = vpop.f32.mrf.mxu0 }
 0x391   :  { %1252 = vtanh.f32 %v372_v60  ;;  %v373_v63 = vmul.f32 %v371_v61, %v1511_v58 }
 0x392   :  { %v366_v3 = vpop.f32.mrf.mxu0 }
 0x393   :  { %1254 = vtanh.f32 %v373_v63 }
 0x39e   :  { %v1253_v5 = vpop.eup %1252 }
 0x39f   :  { %v376_v7 = vmul.f32 %v1253_v5, %v1442_v20 }
 0x3a0   :  { %v1255_v12 = vpop.eup %1254 }
 0x3a1   :  { %v378_v14 = vadd.f32 %v376_v7, %v1446_v28  ;;  %v377_v17 = vmul.f32 %v1255_v12, %v1511_v58 }
 0x3a3   :  { %382 = vrot.lane.b32.xlu0 %v378_v14, %s1315_s19  ;;  %v379_v18 = vadd.f32 %v377_v17, %v1523_v13  ;;  %v380_v19 = vmul.f32 %v378_v14, %v1452_v35 }
 0x3a5   :  { %399 = vrot.lane.b32.xlu1 %v379_v18, %s1315_s19  ;;  %v397_v27 = vmul.f32 0.0, %v379_v18 }
 0x415   :  { %v383_v21 = vpop.permute.xlu0 %382 }
 0x416   :  { %v385_v22 = vmul.f32 %v383_v21, %v378_v14 }
 0x417   :  { %v400_v23 = vpop.permute.xlu1 %399 }
 0x418   :  { %v402_v24 = vmul.f32 %v400_v23, %v379_v18  ;;  %387 = vrot.lane.b32.xlu0 %v385_v22, %s1316_s20 }
 0x41a   :  { %404 = vrot.lane.b32.xlu1 %v402_v24, %s1316_s20 }
 0x48a   :  { %v388_v25 = vpop.permute.xlu0 %387 }
 0x48b   :  { %v390_v26 = vadd.f32 %v388_v25, %v380_v19 }
 0x48c   :  { %v405_v29 = vpop.permute.xlu1 %404 }
 0x48d   :  { %1256 = vtanh.f32 %v390_v26  ;;  %v407_v30 = vadd.f32 %v405_v29, %v397_v27 }
 0x48f   :  { %1258 = vtanh.f32 %v407_v30 }
 0x49a   :  { %v1257_v31 = vpop.eup %1256 }
 0x49b   :  { %393 = vrot.lane.b32.xlu0 %v1257_v31, %s1315_s19 }
 0x49c   :  { %v1259_v32 = vpop.eup %1258 }
 0x49d   :  { %410 = vrot.lane.b32.xlu1 %v1259_v32, %s1315_s19  ;;  %v124_v32 = vadd.f32 %v1477_v44, %v1438_v16 }
 0x50d   :  { %v394_v33 = vpop.permute.xlu0 %393 }
 0x50e   :  { %v396_v34 = vmul.f32 %v394_v33, %v378_v14 }
 0x50f   :  { %v411_v36 = vpop.permute.xlu1 %410 }
 0x510   :  { %v413_v37 = vmul.f32 %v411_v36, %v379_v18  ;;  %415 = vrot.lane.b32.xlu0 %v396_v34, %s1316_s20 }
 0x512   :  { %419 = vrot.lane.b32.xlu1 %v413_v37, %s1315_s19 }
 0x582   :  { %v416_v35 = vpop.permute.xlu0 %415 }
 0x584   :  { %v420_v38 = vpop.permute.xlu1 %419 }
 0x585   :  { %v422_v39 = vsel %vm321_vm4, %v416_v35, %v420_v38 }
 0x586   :  { %v423_v40 = vpack.c.bf16 %v422_v39, %v422_v39 }
 0x588   :  { %1185 = vmatmul.mubr.msk.bf16.vlgmr.msra.gmra.mxu1 %vm250_vm5, %v423_v40 }
 0x589   :  { %636 = vmatpush1.bf16.msra.mxu1 %v1363_v2  ;;  %659 = vmatprep.mubr.bf16.mxu1 %v1312_v1 }
 0x58a   :  { %637 = vmatprep.subr.bf16.mxu1 %v1373_v4 }
 0x58d   :  { %638 = vmatpush1.bf16.msra.mxu1 %v1381_v6 }
 0x58e   :  { %639 = vmatprep.subr.bf16.mxu1 %v1391_v8 }
 0x591   :  { %640 = vmatpush1.bf16.msra.mxu1 %v1398_v9 }
 0x592   :  { %641 = vmatprep.subr.bf16.mxu1 %v1405_v10 }
 0x595   :  { %642 = vmatpush1.bf16.msra.mxu1 %v1413_v11 }
 0x596   :  { %835 = vmatprep.subr.bf16.mxu1 %v1357_v0 }
 0x648   :  { %v461_v42 = vpop.f32.mrf.mxu1 }
 0x649   :  { %v470_v43 = vadd.f32 %v461_v42, %v121_v41 }
 0x64a   :  { %v463_v45 = vpop.f32.mrf.mxu1 }
 0x64b   :  { %v472_v47 = vmul.f32 %v470_v43, %v1442_v20  ;;  %v471_v49 = vadd.f32 %v1503_v56, %v463_v45 }
 0x64c   :  { %v465_v51 = vpop.f32.mrf.mxu1 }
 0x64d   :  { %1260 = vtanh.f32 %v472_v47  ;;  %v473_v52 = vmul.f32 %v471_v49, %v1511_v58 }
 0x64e   :  { %v466_v54 = vpop.f32.mrf.mxu1 }
 0x64f   :  { %1262 = vtanh.f32 %v473_v52 }
 0x65a   :  { %v1261_v55 = vpop.eup %1260 }
 0x65b   :  { %v476_v57 = vmul.f32 %v1261_v55, %v1442_v20 }
 0x65c   :  { %v1263_v59 = vpop.eup %1262 }
 0x65d   :  { %v478_v60 = vadd.f32 %v476_v57, %v1446_v28  ;;  %v477_v15 = vmul.f32 %v1263_v59, %v1511_v58 }
 0x65f   :  { %482 = vrot.lane.b32.xlu0 %v478_v60, %s1315_s19  ;;  %v479_v61 = vadd.f32 %v477_v15, %v1523_v13  ;;  %v480_v7 = vmul.f32 %v478_v60, %v390_v26 }
 0x661   :  { %499 = vrot.lane.b32.xlu1 %v479_v61, %s1315_s19  ;;  %v497_v17 = vmul.f32 %v479_v61, %v407_v30 }
 0x6d1   :  { %v483_v62 = vpop.permute.xlu0 %482 }
 0x6d2   :  { %v485_v63 = vmul.f32 %v483_v62, %v478_v60 }
 0x6d3   :  { %v500_v3 = vpop.permute.xlu1 %499 }
 0x6d4   :  { %v502_v5 = vmul.f32 %v500_v3, %v479_v61  ;;  %487 = vrot.lane.b32.xlu0 %v485_v63, %s1316_s20 }
 0x6d6   :  { %504 = vrot.lane.b32.xlu1 %v502_v5, %s1316_s20 }
 0x746   :  { %v488_v12 = vpop.permute.xlu0 %487 }
 0x747   :  { %v490_v14 = vadd.f32 %v488_v12, %v480_v7 }
 0x748   :  { %v505_v18 = vpop.permute.xlu1 %504 }
 0x749   :  { %1264 = vtanh.f32 %v490_v14  ;;  %v507_v21 = vadd.f32 %v505_v18, %v497_v17 }
 0x74b   :  { %1266 = vtanh.f32 %v507_v21 }
 0x756   :  { %v1265_v22 = vpop.eup %1264 }
 0x757   :  { %493 = vrot.lane.b32.xlu0 %v1265_v22, %s1315_s19  ;;  %v129_v22 = vadd.f32 %v1438_v16, %v1481_v48 }
 0x758   :  { %v1267_v23 = vpop.eup %1266 }
 0x759   :  { %510 = vrot.lane.b32.xlu1 %v1267_v23, %s1315_s19 }
 0x7c9   :  { %v494_v24 = vpop.permute.xlu0 %493 }
 0x7ca   :  { %v496_v19 = vmul.f32 %v494_v24, %v478_v60 }
 0x7cb   :  { %v511_v25 = vpop.permute.xlu1 %510 }
 0x7cc   :  { %v513_v27 = vmul.f32 %v511_v25, %v479_v61  ;;  %515 = vrot.lane.b32.xlu0 %v496_v19, %s1316_s20 }
 0x7ce   :  { %519 = vrot.lane.b32.xlu1 %v513_v27, %s1315_s19 }
 0x83e   :  { %v516_v26 = vpop.permute.xlu0 %515 }
 0x840   :  { %v520_v29 = vpop.permute.xlu1 %519 }
 0x841   :  { %v522_v30 = vsel %vm321_vm4, %v516_v26, %v520_v29 }
 0x842   :  { %v523_v31 = vpack.c.bf16 %v522_v30, %v522_v30 }
 0x844   :  { %1186 = vmatmul.mubr.msk.bf16.vlgmr.msra.gmra.mxu0 %vm250_vm5, %v523_v31 }
 0x845   :  { %736 = vmatpush1.bf16.msra.mxu0 %v1363_v2  ;;  %759 = vmatprep.mubr.bf16.mxu0 %v1312_v1 }
 0x846   :  { %737 = vmatprep.subr.bf16.mxu0 %v1373_v4 }
 0x849   :  { %738 = vmatpush1.bf16.msra.mxu0 %v1381_v6 }
 0x84a   :  { %739 = vmatprep.subr.bf16.mxu0 %v1391_v8 }
 0x84d   :  { %740 = vmatpush1.bf16.msra.mxu0 %v1398_v9 }
 0x84e   :  { %741 = vmatprep.subr.bf16.mxu0 %v1405_v10 }
 0x851   :  { %742 = vmatpush1.bf16.msra.mxu0 %v1413_v11 }
 0x852   :  { %935 = vmatprep.subr.bf16.mxu0 %v1357_v0 }
 0x904   :  { %v561_v33 = vpop.f32.mrf.mxu0 }
 0x905   :  { %v570_v34 = vadd.f32 %v561_v33, %v124_v32 }
 0x906   :  { %v563_v36 = vpop.f32.mrf.mxu0 }
 0x907   :  { %v572_v37 = vmul.f32 %v570_v34, %v1442_v20  ;;  %v571_v35 = vadd.f32 %v1503_v56, %v563_v36 }
 0x908   :  { %v565_v38 = vpop.f32.mrf.mxu0 }
 0x909   :  { %1268 = vtanh.f32 %v572_v37  ;;  %v573_v39 = vmul.f32 %v571_v35, %v1511_v58 }
 0x90a   :  { %v566_v40 = vpop.f32.mrf.mxu0 }
 0x90b   :  { %1270 = vtanh.f32 %v573_v39 }
 0x916   :  { %v1269_v41 = vpop.eup %1268 }
 0x917   :  { %v576_v42 = vmul.f32 %v1269_v41, %v1442_v20 }
 0x918   :  { %v1271_v43 = vpop.eup %1270 }
 0x919   :  { %v578_v45 = vadd.f32 %v576_v42, %v1446_v28  ;;  %v577_v44 = vmul.f32 %v1271_v43, %v1511_v58 }
 0x91b   :  { %582 = vrot.lane.b32.xlu0 %v578_v45, %s1315_s19  ;;  %v579_v47 = vadd.f32 %v577_v44, %v1523_v13  ;;  %v580_v55 = vmul.f32 %v578_v45, %v490_v14 }
 0x91d   :  { %599 = vrot.lane.b32.xlu1 %v579_v47, %s1315_s19  ;;  %v597_v60 = vmul.f32 %v579_v47, %v507_v21 }
 0x98d   :  { %v583_v49 = vpop.permute.xlu0 %582 }
 0x98e   :  { %v585_v51 = vmul.f32 %v583_v49, %v578_v45 }
 0x98f   :  { %v600_v52 = vpop.permute.xlu1 %599 }
 0x990   :  { %v602_v54 = vmul.f32 %v600_v52, %v579_v47  ;;  %587 = vrot.lane.b32.xlu0 %v585_v51, %s1316_s20 }
 0x992   :  { %604 = vrot.lane.b32.xlu1 %v602_v54, %s1316_s20 }
 0xa02   :  { %v588_v57 = vpop.permute.xlu0 %587 }
 0xa03   :  { %v590_v59 = vadd.f32 %v588_v57, %v580_v55 }
 0xa04   :  { %v605_v15 = vpop.permute.xlu1 %604 }
 0xa05   :  { %1272 = vtanh.f32 %v590_v59  ;;  %v607_v61 = vadd.f32 %v605_v15, %v597_v60  ;;  %v132_v15 = vadd.f32 %v1438_v16, %v1493_v53 }
 0xa07   :  { %1274 = vtanh.f32 %v607_v61 }
 0xa12   :  { %v1273_v62 = vpop.eup %1272 }
 0xa13   :  { %593 = vrot.lane.b32.xlu0 %v1273_v62, %s1315_s19 }
 0xa14   :  { %v1275_v63 = vpop.eup %1274 }
 0xa15   :  { %610 = vrot.lane.b32.xlu1 %v1275_v63, %s1315_s19 }
 0xa85   :  { %v594_v3 = vpop.permute.xlu0 %593 }
 0xa86   :  { %v596_v5 = vmul.f32 %v594_v3, %v578_v45 }
 0xa87   :  { %v611_v7 = vpop.permute.xlu1 %610 }
 0xa88   :  { %v613_v12 = vmul.f32 %v611_v7, %v579_v47  ;;  %615 = vrot.lane.b32.xlu0 %v596_v5, %s1316_s20 }
 0xa8a   :  { %619 = vrot.lane.b32.xlu1 %v613_v12, %s1315_s19 }
 0xafa   :  { %v616_v14 = vpop.permute.xlu0 %615 }
 0xafc   :  { %v620_v17 = vpop.permute.xlu1 %619 }
 0xafd   :  { %v622_v18 = vsel %vm321_vm4, %v616_v14, %v620_v17 }
 0xafe   :  { %v623_v21 = vpack.c.bf16 %v622_v18, %v622_v18 }
 0xb00   :  { %1187 = vmatmul.mubr.msk.bf16.vlgmr.msra.gmra.mxu1 %vm250_vm5, %v623_v21 }
 0xb01   :  { %836 = vmatpush1.bf16.msra.mxu1 %v1363_v2  ;;  %859 = vmatprep.mubr.bf16.mxu1 %v1312_v1 }
 0xb02   :  { %837 = vmatprep.subr.bf16.mxu1 %v1373_v4 }
 0xb05   :  { %838 = vmatpush1.bf16.msra.mxu1 %v1381_v6 }
 0xb06   :  { %839 = vmatprep.subr.bf16.mxu1 %v1391_v8 }
 0xb09   :  { %840 = vmatpush1.bf16.msra.mxu1 %v1398_v9 }
 0xb0a   :  { %841 = vmatprep.subr.bf16.mxu1 %v1405_v10 }
 0xb0d   :  { %842 = vmatpush1.bf16.msra.mxu1 %v1413_v11 }
 0xb0e   :  { %1035 = vmatprep.subr.bf16.mxu1 %v1357_v0 }
 0xbc0   :  { %v661_v23 = vpop.f32.mrf.mxu1 }
 0xbc1   :  { %v670_v24 = vadd.f32 %v661_v23, %v129_v22 }
 0xbc2   :  { %v663_v19 = vpop.f32.mrf.mxu1 }
 0xbc3   :  { %v672_v25 = vmul.f32 %v670_v24, %v1442_v20  ;;  %v671_v27 = vadd.f32 %v1503_v56, %v663_v19 }
 0xbc4   :  { %v665_v26 = vpop.f32.mrf.mxu1 }
 0xbc5   :  { %1276 = vtanh.f32 %v672_v25  ;;  %v673_v29 = vmul.f32 %v671_v27, %v1511_v58 }
 0xbc6   :  { %v666_v30 = vpop.f32.mrf.mxu1 }
 0xbc7   :  { %1278 = vtanh.f32 %v673_v29 }
 0xbd2   :  { %v1277_v31 = vpop.eup %1276 }
 0xbd3   :  { %v676_v32 = vmul.f32 %v1277_v31, %v1442_v20 }
 0xbd4   :  { %v1279_v0 = vpop.eup %1278 }
 0xbd5   :  { %v678_v33 = vadd.f32 %v676_v32, %v1446_v28  ;;  %v677_v48 = vmul.f32 %v1279_v0, %v1511_v58 }
 0xbd7   :  { %682 = vrot.lane.b32.xlu0 %v678_v33, %s1315_s19  ;;  %v679_v34 = vadd.f32 %v677_v48, %v1523_v13  ;;  %v680_v39 = vmul.f32 %v678_v33, %v590_v59 }
 0xbd9   :  { %699 = vrot.lane.b32.xlu1 %v679_v34, %s1315_s19  ;;  %v697_v42 = vmul.f32 %v679_v34, %v607_v61 }
 0xc49   :  { %v683_v36 = vpop.permute.xlu0 %682 }
 0xc4a   :  { %v685_v37 = vmul.f32 %v683_v36, %v678_v33 }
 0xc4b   :  { %v700_v35 = vpop.permute.xlu1 %699 }
 0xc4c   :  { %v702_v38 = vmul.f32 %v700_v35, %v679_v34  ;;  %687 = vrot.lane.b32.xlu0 %v685_v37, %s1316_s20 }
 0xc4e   :  { %704 = vrot.lane.b32.xlu1 %v702_v38, %s1316_s20 }
 0xcbe   :  { %v688_v40 = vpop.permute.xlu0 %687 }
 0xcbf   :  { %v690_v41 = vadd.f32 %v688_v40, %v680_v39 }
 0xcc0   :  { %v705_v43 = vpop.permute.xlu1 %704 }
 0xcc1   :  { %1280 = vtanh.f32 %v690_v41  ;;  %v707_v45 = vadd.f32 %v705_v43, %v697_v42  ;;  %v137_v42 = vadd.f32 %v1479_v46, %v1438_v16 }
 0xcc3   :  { %1282 = vtanh.f32 %v707_v45 }
 0xcce   :  { %v1281_v44 = vpop.eup %1280 }
 0xccf   :  { %693 = vrot.lane.b32.xlu0 %v1281_v44, %s1315_s19 }
 0xcd0   :  { %v1283_v47 = vpop.eup %1282 }
 0xcd1   :  { %710 = vrot.lane.b32.xlu1 %v1283_v47, %s1315_s19 }
 0xd41   :  { %v694_v49 = vpop.permute.xlu0 %693 }
 0xd42   :  { %v696_v51 = vmul.f32 %v694_v49, %v678_v33 }
 0xd43   :  { %v711_v52 = vpop.permute.xlu1 %710 }
 0xd44   :  { %v713_v54 = vmul.f32 %v711_v52, %v679_v34  ;;  %715 = vrot.lane.b32.xlu0 %v696_v51, %s1316_s20 }
 0xd46   :  { %719 = vrot.lane.b32.xlu1 %v713_v54, %s1315_s19 }
 0xdb6   :  { %v716_v55 = vpop.permute.xlu0 %715 }
 0xdb8   :  { %v720_v57 = vpop.permute.xlu1 %719 }
 0xdb9   :  { %v722_v59 = vsel %vm321_vm4, %v716_v55, %v720_v57 }
 0xdba   :  { %v723_v60 = vpack.c.bf16 %v722_v59, %v722_v59 }
 0xdbc   :  { %1188 = vmatmul.mubr.msk.bf16.vlgmr.msra.gmra.mxu0 %vm250_vm5, %v723_v60 }
 0xdbd   :  { %936 = vmatpush1.bf16.msra.mxu0 %v1363_v2  ;;  %959 = vmatprep.mubr.bf16.mxu0 %v1312_v1 }
 0xdbe   :  { %937 = vmatprep.subr.bf16.mxu0 %v1373_v4 }
 0xdc1   :  { %938 = vmatpush1.bf16.msra.mxu0 %v1381_v6 }
 0xdc2   :  { %939 = vmatprep.subr.bf16.mxu0 %v1391_v8 }
 0xdc5   :  { %940 = vmatpush1.bf16.msra.mxu0 %v1398_v9 }
 0xdc6   :  { %941 = vmatprep.subr.bf16.mxu0 %v1405_v10 }
 0xdc9   :  { %942 = vmatpush1.bf16.msra.mxu0 %v1413_v11 }
 0xe7c   :  { %v761_v61 = vpop.f32.mrf.mxu0 }
 0xe7d   :  { %v770_v62 = vadd.f32 %v761_v61, %v132_v15 }
 0xe7e   :  { %v763_v63 = vpop.f32.mrf.mxu0 }
 0xe7f   :  { %v772_v3 = vmul.f32 %v770_v62, %v1442_v20  ;;  %v771_v5 = vadd.f32 %v1503_v56, %v763_v63 }
 0xe80   :  { %v765_v7 = vpop.f32.mrf.mxu0 }
 0xe81   :  { %1284 = vtanh.f32 %v772_v3  ;;  %v773_v12 = vmul.f32 %v771_v5, %v1511_v58 }
 0xe82   :  { %v766_v14 = vpop.f32.mrf.mxu0 }
 0xe83   :  { %1286 = vtanh.f32 %v773_v12 }
 0xe8e   :  { %v1285_v17 = vpop.eup %1284 }
 0xe8f   :  { %v776_v18 = vmul.f32 %v1285_v17, %v1442_v20 }
 0xe90   :  { %v1287_v21 = vpop.eup %1286 }
 0xe91   :  { %v778_v22 = vadd.f32 %v776_v18, %v1446_v28  ;;  %v777_v53 = vmul.f32 %v1287_v21, %v1511_v58 }
 0xe93   :  { %782 = vrot.lane.b32.xlu0 %v778_v22, %s1315_s19  ;;  %v779_v23 = vadd.f32 %v777_v53, %v1523_v13  ;;  %v780_v26 = vmul.f32 %v778_v22, %v690_v41  ;;  %v140_v53 = vadd.f32 %v1483_v50, %v1438_v16 }
 0xe95   :  { %799 = vrot.lane.b32.xlu1 %v779_v23, %s1315_s19  ;;  %v797_v31 = vmul.f32 %v779_v23, %v707_v45 }
 0xf05   :  { %v783_v24 = vpop.permute.xlu0 %782 }
 0xf06   :  { %v785_v19 = vmul.f32 %v783_v24, %v778_v22 }
 0xf07   :  { %v800_v25 = vpop.permute.xlu1 %799 }
 0xf08   :  { %v802_v27 = vmul.f32 %v800_v25, %v779_v23  ;;  %787 = vrot.lane.b32.xlu0 %v785_v19, %s1316_s20 }
 0xf0a   :  { %804 = vrot.lane.b32.xlu1 %v802_v27, %s1316_s20 }
 0xf7a   :  { %v788_v29 = vpop.permute.xlu0 %787 }
 0xf7b   :  { %v790_v30 = vadd.f32 %v788_v29, %v780_v26 }
 0xf7c   :  { %v805_v32 = vpop.permute.xlu1 %804 }
 0xf7d   :  { %1288 = vtanh.f32 %v790_v30  ;;  %v807_v0 = vadd.f32 %v805_v32, %v797_v31 }
 0xf7f   :  { %1290 = vtanh.f32 %v807_v0 }
 0xf8a   :  { %v1289_v33 = vpop.eup %1288 }
 0xf8b   :  { %793 = vrot.lane.b32.xlu0 %v1289_v33, %s1315_s19 }
 0xf8c   :  { %v1291_v48 = vpop.eup %1290 }
 0xf8d   :  { %810 = vrot.lane.b32.xlu1 %v1291_v48, %s1315_s19 }
 0xffd   :  { %v794_v34 = vpop.permute.xlu0 %793 }
 0xffe   :  { %v796_v36 = vmul.f32 %v794_v34, %v778_v22 }
 0xfff   :  { %v811_v37 = vpop.permute.xlu1 %810 }
0x1000   :  { %v813_v35 = vmul.f32 %v811_v37, %v779_v23  ;;  %815 = vrot.lane.b32.xlu0 %v796_v36, %s1316_s20 }
0x1002   :  { %819 = vrot.lane.b32.xlu1 %v813_v35, %s1315_s19 }
0x1072   :  { %v816_v38 = vpop.permute.xlu0 %815 }
0x1074   :  { %v820_v39 = vpop.permute.xlu1 %819 }
0x1075   :  { %v822_v40 = vsel %vm321_vm4, %v816_v38, %v820_v39 }
0x1076   :  { %v823_v41 = vpack.c.bf16 %v822_v40, %v822_v40 }
0x1078   :  { %1189 = vmatmul.mubr.msk.bf16.vlgmr.msra.gmra.mxu1 %vm250_vm5, %v823_v41 }
0x1079   :  { %1036 = vmatpush1.bf16.msra.mxu1 %v1363_v2  ;;  %1059 = vmatprep.mubr.bf16.mxu1 %v1312_v1 }
0x107a   :  { %1037 = vmatprep.subr.bf16.mxu1 %v1373_v4 }
0x107d   :  { %1038 = vmatpush1.bf16.msra.mxu1 %v1381_v6 }
0x107e   :  { %1039 = vmatprep.subr.bf16.mxu1 %v1391_v8 }
0x1081   :  { %1040 = vmatpush1.bf16.msra.mxu1 %v1398_v9 }
0x1082   :  { %1041 = vmatprep.subr.bf16.mxu1 %v1405_v10 }
0x1085   :  { %1042 = vmatpush1.bf16.msra.mxu1 %v1413_v11 }
0x1138   :  { %v861_v43 = vpop.f32.mrf.mxu1 }
0x1139   :  { %v870_v45 = vadd.f32 %v861_v43, %v137_v42 }
0x113a   :  { %v863_v2 = vpop.f32.mrf.mxu1 }
0x113b   :  { %v872_v1 = vmul.f32 %v870_v45, %v1442_v20  ;;  %v871_v4 = vadd.f32 %v1503_v56, %v863_v2 }
0x113c   :  { %v865_v44 = vpop.f32.mrf.mxu1 }
0x113d   :  { %1292 = vtanh.f32 %v872_v1  ;;  %v873_v6 = vmul.f32 %v871_v4, %v1511_v58 }
0x113e   :  { %v866_v8 = vpop.f32.mrf.mxu1 }
0x113f   :  { %1294 = vtanh.f32 %v873_v6 }
0x114a   :  { %v1293_v9 = vpop.eup %1292 }
0x114b   :  { %v876_v10 = vmul.f32 %v1293_v9, %v1442_v20 }
0x114c   :  { %v1295_v11 = vpop.eup %1294 }
0x114d   :  { %v878_v47 = vadd.f32 %v876_v10, %v1446_v28  ;;  %v877_v46 = vmul.f32 %v1295_v11, %v1511_v58 }
0x114f   :  { %882 = vrot.lane.b32.xlu0 %v878_v47, %s1315_s19  ;;  %v879_v49 = vadd.f32 %v877_v46, %v1523_v13  ;;  %v880_v57 = vmul.f32 %v878_v47, %v790_v30 }
0x1151   :  { %899 = vrot.lane.b32.xlu1 %v879_v49, %s1315_s19  ;;  %v897_v15 = vmul.f32 %v879_v49, %v807_v0 }
0x11c1   :  { %v883_v51 = vpop.permute.xlu0 %882 }
0x11c2   :  { %v885_v52 = vmul.f32 %v883_v51, %v878_v47 }
0x11c3   :  { %v900_v54 = vpop.permute.xlu1 %899 }
0x11c4   :  { %v902_v55 = vmul.f32 %v900_v54, %v879_v49  ;;  %887 = vrot.lane.b32.xlu0 %v885_v52, %s1316_s20 }
0x11c6   :  { %904 = vrot.lane.b32.xlu1 %v902_v55, %s1316_s20 }
0x1236   :  { %v888_v59 = vpop.permute.xlu0 %887 }
0x1237   :  { %v890_v60 = vadd.f32 %v888_v59, %v880_v57 }
0x1238   :  { %v905_v61 = vpop.permute.xlu1 %904 }
0x1239   :  { %1296 = vtanh.f32 %v890_v60  ;;  %v907_v62 = vadd.f32 %v905_v61, %v897_v15  ;;  %v1246_v61 = vld [vmem:[%s1721_s4 + $0x8] sm:$0xff]  }
0x123b   :  { %1298 = vtanh.f32 %v907_v62 }
0x1246   :  { %v1297_v63 = vpop.eup %1296 }
0x1247   :  { %893 = vrot.lane.b32.xlu0 %v1297_v63, %s1315_s19 }
0x1248   :  { %v1299_v3 = vpop.eup %1298 }
0x1249   :  { %910 = vrot.lane.b32.xlu1 %v1299_v3, %s1315_s19 }
0x12b9   :  { %v894_v5 = vpop.permute.xlu0 %893 }
0x12ba   :  { %v896_v7 = vmul.f32 %v894_v5, %v878_v47 }
0x12bb   :  { %v911_v12 = vpop.permute.xlu1 %910 }
0x12bc   :  { %v913_v14 = vmul.f32 %v911_v12, %v879_v49  ;;  %915 = vrot.lane.b32.xlu0 %v896_v7, %s1316_s20  ;;  %v1192_v7 = vld [vmem:[%s1722_s5] ss:$0 sm:$0xff] }
0x12be   :  { %919 = vrot.lane.b32.xlu1 %v913_v14, %s1315_s19 }
0x132e   :  { %v916_v17 = vpop.permute.xlu0 %915 }
0x1330   :  { %v920_v18 = vpop.permute.xlu1 %919 }
0x1331   :  { %v922_v21 = vsel %vm321_vm4, %v916_v17, %v920_v18 }
0x1332   :  { %v923_v22 = vpack.c.bf16 %v922_v21, %v922_v21 }
0x1334   :  { %1190 = vmatmul.mubr.msk.bf16.vlgmr.msra.gmra.mxu0 %vm250_vm5, %v923_v22 }
0x13f4   :  { %v961_v23 = vpop.f32.mrf.mxu0 }
0x13f5   :  { %v970_v24 = vadd.f32 %v961_v23, %v140_v53 }
0x13f6   :  { %v963_v19 = vpop.f32.mrf.mxu0 }
0x13f7   :  { %v972_v25 = vmul.f32 %v970_v24, %v1442_v20  ;;  %v971_v27 = vadd.f32 %v1503_v56, %v963_v19 }
0x13f8   :  { %v965_v26 = vpop.f32.mrf.mxu0 }
0x13f9   :  { %1300 = vtanh.f32 %v972_v25  ;;  %v973_v29 = vmul.f32 %v971_v27, %v1511_v58 }
0x13fa   :  { %v966_v30 = vpop.f32.mrf.mxu0 }
0x13fb   :  { %1302 = vtanh.f32 %v973_v29 }
0x1406   :  { %v1301_v31 = vpop.eup %1300 }
0x1407   :  { %v976_v32 = vmul.f32 %v1301_v31, %v1442_v20 }
0x1408   :  { %v1303_v0 = vpop.eup %1302 }
0x1409   :  { %v978_v33 = vadd.f32 %v976_v32, %v1446_v28  ;;  %v977_v16 = vmul.f32 %v1303_v0, %v1511_v58 }
0x140b   :  { %982 = vrot.lane.b32.xlu0 %v978_v33, %s1315_s19  ;;  %v979_v50 = vadd.f32 %v977_v16, %v1523_v13  ;;  %v980_v20 = vmul.f32 %v978_v33, %v890_v60 }
0x140d   :  { %999 = vrot.lane.b32.xlu1 %v979_v50, %s1315_s19  ;;  %v997_v28 = vmul.f32 %v979_v50, %v907_v62 }
0x147d   :  { %v983_v48 = vpop.permute.xlu0 %982 }
0x147e   :  { %v985_v34 = vmul.f32 %v983_v48, %v978_v33 }
0x147f   :  { %v1000_v36 = vpop.permute.xlu1 %999 }
0x1480   :  { %v1002_v37 = vmul.f32 %v1000_v36, %v979_v50  ;;  %987 = vrot.lane.b32.xlu0 %v985_v34, %s1316_s20 }
0x1482   :  { %1004 = vrot.lane.b32.xlu1 %v1002_v37, %s1316_s20 }
0x14f2   :  { %v988_v35 = vpop.permute.xlu0 %987 }
0x14f3   :  { %v990_v38 = vadd.f32 %v988_v35, %v980_v20 }
0x14f4   :  { %v1005_v39 = vpop.permute.xlu1 %1004 }
0x14f5   :  { %1304 = vtanh.f32 %v990_v38  ;;  %v1007_v40 = vadd.f32 %v1005_v39, %v997_v28 }
0x14f7   :  { %1306 = vtanh.f32 %v1007_v40 }
0x1502   :  { %v1305_v41 = vpop.eup %1304 }
0x1503   :  { %993 = vrot.lane.b32.xlu0 %v1305_v41, %s1315_s19 }
0x1504   :  { %v1307_v42 = vpop.eup %1306 }
0x1505   :  { %1010 = vrot.lane.b32.xlu1 %v1307_v42, %s1315_s19 }
0x1575   :  { %v994_v43 = vpop.permute.xlu0 %993 }
0x1576   :  { %v996_v45 = vmul.f32 %v994_v43, %v978_v33 }
0x1577   :  { %v1011_v2 = vpop.permute.xlu1 %1010 }
0x1578   :  { %v1013_v1 = vmul.f32 %v1011_v2, %v979_v50  ;;  %1015 = vrot.lane.b32.xlu0 %v996_v45, %s1316_s20 }
0x157a   :  { %1019 = vrot.lane.b32.xlu1 %v1013_v1, %s1315_s19 }
0x15ea   :  { %v1016_v4 = vpop.permute.xlu0 %1015 }
0x15ec   :  { %v1020_v44 = vpop.permute.xlu1 %1019 }
0x15ed   :  { %v1022_v6 = vsel %vm321_vm4, %v1016_v4, %v1020_v44 }
0x15ee   :  { %v1023_v8 = vpack.c.bf16 %v1022_v6, %v1022_v6 }
0x15f0   :  { %1191 = vmatmul.mubr.msk.bf16.vlgmr.msra.gmra.mxu1 %vm250_vm5, %v1023_v8 }
0x16b0   :  { %v1061_v9 = vpop.f32.mrf.mxu1 }
0x16b2   :  { %v1062_v10 = vpop.f32.mrf.mxu1 }
0x16b3   :  { %v1067_v11 = vadd.f32 %v1503_v56, %v1062_v10  ;;  %v1317_v56 = vmov 0.0  }
0x16b4   :  { %v1064_v47 = vpop.f32.mrf.mxu1  ;;  %1214 = vmatprep.subr.bf16.mxu0 %v1317_v56  ;;  %1218 = vmatprep.mubr.msk.bf16.mxu0 %vm1318_vm9, %v1317_v56 }
0x16b5   :  { %v1068_v46 = vmul.f32 %v1067_v11, %v1511_v58  ;;  %1215 = vmatpush3.bf16.msra.mxu0 %v1246_v61 }
0x16b6   :  { %v1065_v49 = vpop.f32.mrf.mxu1  ;;  %1216 = vmatprep.subr.bf16.mxu0 %v1317_v56 }
0x16b7   :  { %1308 = vtanh.f32 %v1068_v46 }
0x16c4   :  { %v1309_v51 = vpop.eup %1308 }
0x16c5   :  { %v1070_v52 = vmul.f32 %v1309_v51, %v1511_v58  ;;  %v1247_v58 = vld [vmem:[%s1721_s4] sm:$0xff]  }
0x16c6   :  { %1217 = vmatpush3.bf16.msra.mxu0 %v1247_v58 }
0x16c7   :  { %v1071_v54 = vadd.f32 %v1070_v52, %v1523_v13 }
0x16c9   :  { %1074 = vrot.lane.b32.xlu0 %v1071_v54, %s1315_s19  ;;  %v1072_v59 = vmul.f32 %v1071_v54, %v1007_v40 }
0x173b   :  { %v1075_v55 = vpop.permute.xlu0 %1074 }
0x173c   :  { %v1077_v57 = vmul.f32 %v1075_v55, %v1071_v54 }
0x173e   :  { %1079 = vrot.lane.b32.xlu1 %v1077_v57, %s1316_s20 }
0x17b0   :  { %v1080_v60 = vpop.permute.xlu1 %1079 }
0x17b1   :  { %v1082_v15 = vadd.f32 %v1080_v60, %v1072_v59 }
0x17b3   :  { %1310 = vtanh.f32 %v1082_v15 }
0x17c0   :  { %v1311_v13 = vpop.eup %1310 }
0x17c1   :  { %1085 = vrot.lane.b32.xlu0 %v1311_v13, %s1315_s19 }
0x1833   :  { %v1086_v62 = vpop.permute.xlu0 %1085 }
0x1834   :  { %v1088_v63 = vmul.f32 %v1086_v62, %v1071_v54 }
0x1836   :  { %v1089_v3 = vpack.c.bf16 %v1088_v63, %v1088_v63 }
0x1838   :  { %1102 = vrot.lane.b32.xlu1 %v1089_v3, %s1316_s20 }
0x18aa   :  { %v1103_v5 = vpop.permute.xlu1 %1102 }
0x18ab   :  { %1219 = vmatmul.mubr.msk.bf16.vlgmr.msra.gmra.mxu0 %vm321_vm4, %v1103_v5 }
0x196b   :  { %v1153_v12 = vpop.f32.mrf.mxu0 }
0x196c   :  { %v1154_v14 = vadd.f32 %v1192_v7, %v1153_v12 }
0x196d   :  { %v1220_v17 = vpop.f32.mrf.mxu0 }
0x196e   :  { %1160 = vst.msk [vmem:[%s1723_s6] sm:$0xff] %vm1159_vm10, %v1154_v14 }
0x196f   :  { %v1156_v18 = vpop.f32.mrf.mxu0 }
0x1971   :  { %v1221_v21 = vpop.f32.mrf.mxu0 }

</bundles_post_ra>
